<compile_context>
chip_gen: v7x
topology: tpu7x:2x2x1
jax: 0.10.0
libtpu: 0.0.40
codegen_flags: <defaults>
</compile_context>

<pallas_src>
import functools

import jax
import jax.numpy as jnp
from jax import lax
from jax.experimental import pallas as pl
from jax.experimental.pallas import tpu as pltpu


def ffn_kernel(x_ref, w1_ref, b1_ref, w2_ref, b2_ref, o_ref, acc_ref):
    # x_ref:  (tm, d_model)        bf16
    # w1_ref: (tk_ff, d_model)     bf16, PyTorch layout tile of W1
    # b1_ref: (1, tk_ff)           f32
    # w2_ref: (d_model, tk_ff)     bf16, PyTorch layout tile of W2
    # b2_ref: (1, d_model)         f32
    # o_ref:  (tm, d_model)        output dtype
    # acc_ref:(tm, d_model)        f32 VMEM accumulator (persists across k axis)
    k = pl.program_id(1)

    @pl.when(k == 0)
    def _init():
        acc_ref[...] = jnp.zeros_like(acc_ref)

    # h_k = relu(x @ W1_k^T + b1_k)   -- contract d_model (axis 1 of both operands).
    h = lax.dot_general(
        x_ref[...], w1_ref[...],
        dimension_numbers=(((1,), (1,)), ((), ())),
        preferred_element_type=jnp.float32)              # (tm, tk_ff), f32
    h = jnp.maximum(h + b1_ref[...], 0.0)                # bias + ReLU in f32 on the VPU
    # dropout (eval mode) == identity

    # acc += h_k @ W2_k^T   -- contract the d_ff tile (axis 1 of both operands).
    acc_ref[...] += lax.dot_general(
        h.astype(w2_ref.dtype), w2_ref[...],
        dimension_numbers=(((1,), (1,)), ((), ())),
        preferred_element_type=jnp.float32)              # (tm, d_model), f32

    @pl.when(k == pl.num_programs(1) - 1)
    def _finalize():
        o_ref[...] = (acc_ref[...] + b2_ref[...]).astype(o_ref.dtype)


def _round_up(x, m):
    return ((x + m - 1) // m) * m


@functools.partial(jax.jit, static_argnames=("tm", "tk_ff"))
def positionwise_ffn(x, w1, b1, w2, b2, *, tm=256, tk_ff=512):
    """Position-wise FFN.  x: (B, S, d_model); weights in PyTorch nn.Linear layout:
    w1: (d_ff, d_model), b1: (d_ff,), w2: (d_model, d_ff), b2: (d_model,).
    Returns (B, S, d_model) in x.dtype.  Best perf when d_model/d_ff are multiples of 128.
    """
    B, S, d_model = x.shape
    d_ff = w1.shape[0]
    out_dtype = x.dtype
    compute_dtype = jnp.bfloat16

    # bf16 MXU operands, f32 biases (added to the f32 accumulator / epilogue).
    x_flat = x.reshape(B * S, d_model).astype(compute_dtype)
    w1_c = w1.astype(compute_dtype)                 # (d_ff, d_model), no transpose
    w2_c = w2.astype(compute_dtype)                 # (d_model, d_ff), no transpose
    b1_2d = b1.reshape(1, d_ff).astype(jnp.float32)
    b2_2d = b2.reshape(1, d_model).astype(jnp.float32)

    # --- Row tiling: clamp tile to the problem, pad rows so every tile is full. ---
    N = B * S
    tm_eff = min(tm, _round_up(N, 16))              # multiple of 16 (bf16 sublane packing)
    N_pad = _round_up(N, tm_eff)
    if N_pad != N:
        x_flat = jnp.pad(x_flat, ((0, N_pad - N), (0, 0)))

    # --- d_ff reduction tiling: tile must be a multiple of 128 (lane dim) or full d_ff. ---
    if d_ff % tk_ff == 0 and tk_ff % 128 == 0:
        tk = tk_ff
    else:
        tk = d_ff                                   # fall back to full dim (always legal)
    n_k = d_ff // tk

    # Advisory cost estimate (two matmuls: 2*N*d_model*d_ff flops each).
    bytes_accessed = (
        N_pad * d_model * 2                         # x (bf16)
        + d_ff * d_model * 2 * 2                    # W1 + W2 (bf16)
        + (d_ff + d_model) * 4                      # biases (f32)
        + N_pad * d_model * jnp.dtype(out_dtype).itemsize)  # output
    cost = pl.CostEstimate(flops=4 * N_pad * d_model * d_ff,
                           transcendentals=0,
                           bytes_accessed=int(bytes_accessed))

    out_flat = pl.pallas_call(
        ffn_kernel,
        out_shape=jax.ShapeDtypeStruct((N_pad, d_model), out_dtype),
        grid_spec=pltpu.PrefetchScalarGridSpec(
            num_scalar_prefetch=0,
            grid=(N_pad // tm_eff, n_k),            # rows (parallel), d_ff (reduction, last)
            in_specs=[
                pl.BlockSpec((tm_eff, d_model), lambda i, k: (i, 0)),  # x row tile
                pl.BlockSpec((tk, d_model), lambda i, k: (k, 0)),      # W1 d_ff tile
                pl.BlockSpec((1, tk), lambda i, k: (0, k)),            # b1 d_ff tile
                pl.BlockSpec((d_model, tk), lambda i, k: (0, k)),      # W2 d_ff tile
                pl.BlockSpec((1, d_model), lambda i, k: (0, 0)),       # b2
            ],
            out_specs=pl.BlockSpec((tm_eff, d_model), lambda i, k: (i, 0)),
            scratch_shapes=[pltpu.VMEM((tm_eff, d_model), jnp.float32)],
        ),
        compiler_params=pltpu.CompilerParams(
            dimension_semantics=("parallel", "arbitrary")),
        cost_estimate=cost,
    )(x_flat, w1_c, b1_2d, w2_c, b2_2d)

    return out_flat[:N].reshape(B, S, d_model)


def init_params(key, d_model, d_ff, dtype=jnp.float32):
    """Deterministic init matching nn.Linear shapes (uniform, kaiming-style bound)."""
    k1, k2, k3, k4 = jax.random.split(key, 4)
    bound1 = 1.0 / (d_model ** 0.5)
    bound2 = 1.0 / (d_ff ** 0.5)
    w1 = jax.random.uniform(k1, (d_ff, d_model), dtype, -bound1, bound1)
    b1 = jax.random.uniform(k2, (d_ff,), dtype, -bound1, bound1)
    w2 = jax.random.uniform(k3, (d_model, d_ff), dtype, -bound2, bound2)
    b2 = jax.random.uniform(k4, (d_model,), dtype, -bound2, bound2)
    return w1, b1, w2, b2


if __name__ == "__main__":
    key = jax.random.PRNGKey(0)
    B, S, d_model, d_ff = 2, 8, 32, 64

    kx, kp = jax.random.split(key)
    x = jax.random.normal(kx, (B, S, d_model), jnp.float32)
    w1, b1, w2, b2 = init_params(kp, d_model, d_ff)

    # Pass weights pre-cast to bf16 so the steady-state path does no per-call
    # dtype conversion of the (large) weight matrices inside the jit.
    out = positionwise_ffn(x, w1.astype(jnp.bfloat16), b1,
                           w2.astype(jnp.bfloat16), b2)
    out = jax.block_until_ready(out)

    # Pure-JAX reference (eval-mode dropout == identity) with matching bf16 rounding.
    f32 = jnp.float32
    xb = x.astype(jnp.bfloat16).astype(f32)
    w1b = w1.astype(jnp.bfloat16).astype(f32)
    w2b = w2.astype(jnp.bfloat16).astype(f32)
    h_ref = jnp.maximum(xb @ w1b.T + b1, 0.0)
    ref = h_ref.astype(jnp.bfloat16).astype(f32) @ w2b.T + b2

    assert out.shape == (B, S, d_model)
    assert jnp.allclose(out.astype(f32), ref, atol=2e-2, rtol=2e-2), "mismatch vs reference"

    print("KERNEL_OK")
</pallas_src>

<mosaic_0001>
module attributes {stable_mosaic.version = 11 : i64} {
  func.func @ffn_kernel(%arg0: i32, %arg1: i32, %arg2: memref<16x32xbf16, #tpu.memory_space<vmem>>, %arg3: memref<64x32xbf16, #tpu.memory_space<vmem>>, %arg4: memref<1x64xf32, #tpu.memory_space<vmem>>, %arg5: memref<32x64xbf16, #tpu.memory_space<vmem>>, %arg6: memref<1x32xf32, #tpu.memory_space<vmem>>, %arg7: memref<16x32xf32, #tpu.memory_space<vmem>>, %arg8: memref<16x32xf32, #tpu.memory_space<vmem>>) attributes {dimension_semantics = [#tpu.dimension_semantics<parallel>, #tpu.dimension_semantics<arbitrary>], iteration_bounds = array<i64: 1, 1>, scalar_prefetch = 0 : i64, scratch_operands = 1 : i64, tpu.core_type = #tpu.core_type<tc>, window_params = [{transform_indices = @transform_0, window_bounds = array<i64: 16, 32>}, {transform_indices = @transform_1, window_bounds = array<i64: 64, 32>}, {transform_indices = @transform_2, window_bounds = array<i64: 1, 64>}, {transform_indices = @transform_3, window_bounds = array<i64: 32, 64>}, {pipeline_mode = #tpu.pipeline_mode<synchronous>, transform_indices = @transform_4, window_bounds = array<i64: 1, 32>}, {transform_indices = @transform_5, window_bounds = array<i64: 16, 32>}]} {
    %c0_i32 = arith.constant 0 : i32
    %0 = arith.cmpi eq, %arg1, %c0_i32 : i32
    %1 = arith.extui %0 : i1 to i32
    %c0_i32_0 = arith.constant 0 : i32
    %2 = arith.cmpi ne, %1, %c0_i32_0 : i32
    scf.if %2 {
      %cst_16 = arith.constant 0.000000e+00 : f32
      %20 = vector.broadcast %cst_16 : f32 to vector<16x32xf32>
      %c0_17 = arith.constant 0 : index
      %c0_18 = arith.constant 0 : index
      %21 = vector.load %arg8[%c0_17, %c0_18] : memref<16x32xf32, #tpu.memory_space<vmem>>, vector<16x32xf32>
      tpu.vector_store %arg8[%c0_17, %c0_18], %20 {strides = array<i32>} : memref<16x32xf32, #tpu.memory_space<vmem>>, vector<16x32xf32>,
    } else {
    }
    %c0 = arith.constant 0 : index
    %c0_1 = arith.constant 0 : index
    %3 = vector.load %arg2[%c0, %c0_1] : memref<16x32xbf16, #tpu.memory_space<vmem>>, vector<16x32xbf16>
    %c0_2 = arith.constant 0 : index
    %c0_3 = arith.constant 0 : index
    %4 = vector.load %arg3[%c0_2, %c0_3] : memref<64x32xbf16, #tpu.memory_space<vmem>>, vector<64x32xbf16>
    %cst = arith.constant dense<0.000000e+00> : vector<16x64xf32>
    %5 = tpu.matmul %3, %4, %cst {dimension_numbers = #tpu.dot_dimension_numbers<[1], [1], [0], [0], [0, 0, 1, 0], [], []>} : vector<16x32xbf16>, vector<64x32xbf16>, vector<16x64xf32> -> vector<16x64xf32>
    %c0_4 = arith.constant 0 : index
    %c0_5 = arith.constant 0 : index
    %6 = vector.load %arg4[%c0_4, %c0_5] : memref<1x64xf32, #tpu.memory_space<vmem>>, vector<1x64xf32>
    %7 = vector.broadcast %6 : vector<1x64xf32> to vector<16x64xf32>
    %8 = arith.addf %5, %7 : vector<16x64xf32>
    %cst_6 = arith.constant 0.000000e+00 : f32
    %9 = vector.broadcast %cst_6 : f32 to vector<16x64xf32>
    %10 = arith.maximumf %8, %9 : vector<16x64xf32>
    %c0_7 = arith.constant 0 : index
    %c0_8 = arith.constant 0 : index
    %11 = vector.load %arg8[%c0_7, %c0_8] : memref<16x32xf32, #tpu.memory_space<vmem>>, vector<16x32xf32>
    %12 = arith.truncf %10 : vector<16x64xf32> to vector<16x64xbf16>
    %c0_9 = arith.constant 0 : index
    %c0_10 = arith.constant 0 : index
    %13 = vector.load %arg5[%c0_9, %c0_10] : memref<32x64xbf16, #tpu.memory_space<vmem>>, vector<32x64xbf16>
    %cst_11 = arith.constant dense<0.000000e+00> : vector<16x32xf32>
    %14 = tpu.matmul %12, %13, %cst_11 {dimension_numbers = #tpu.dot_dimension_numbers<[1], [1], [0], [0], [0, 0, 1, 0], [], []>} : vector<16x64xbf16>, vector<32x64xbf16>, vector<16x32xf32> -> vector<16x32xf32>
    %15 = arith.addf %11, %14 : vector<16x32xf32>
    %c0_12 = arith.constant 0 : index
    %c0_13 = arith.constant 0 : index
    %16 = vector.load %arg8[%c0_12, %c0_13] : memref<16x32xf32, #tpu.memory_space<vmem>>, vector<16x32xf32>
    tpu.vector_store %arg8[%c0_12, %c0_13], %15 {strides = array<i32>} : memref<16x32xf32, #tpu.memory_space<vmem>>, vector<16x32xf32>,
    %c0_i32_14 = arith.constant 0 : i32
    %17 = arith.cmpi eq, %arg1, %c0_i32_14 : i32
    %18 = arith.extui %17 : i1 to i32
    %c0_i32_15 = arith.constant 0 : i32
    %19 = arith.cmpi ne, %18, %c0_i32_15 : i32
    scf.if %19 {
      %c0_16 = arith.constant 0 : index
      %c0_17 = arith.constant 0 : index
      %20 = vector.load %arg8[%c0_16, %c0_17] : memref<16x32xf32, #tpu.memory_space<vmem>>, vector<16x32xf32>
      %c0_18 = arith.constant 0 : index
      %c0_19 = arith.constant 0 : index
      %21 = vector.load %arg6[%c0_18, %c0_19] : memref<1x32xf32, #tpu.memory_space<vmem>>, vector<1x32xf32>
      %22 = vector.broadcast %21 : vector<1x32xf32> to vector<16x32xf32>
      %23 = arith.addf %20, %22 : vector<16x32xf32>
      %c0_20 = arith.constant 0 : index
      %c0_21 = arith.constant 0 : index
      %24 = vector.load %arg7[%c0_20, %c0_21] : memref<16x32xf32, #tpu.memory_space<vmem>>, vector<16x32xf32>
      tpu.vector_store %arg7[%c0_20, %c0_21], %23 {strides = array<i32>} : memref<16x32xf32, #tpu.memory_space<vmem>>, vector<16x32xf32>,
    } else {
    }
    return
  }
  func.func @transform_0(%arg0: i32, %arg1: i32) -> (i32, i32) {
    %c0_i32 = arith.constant 0 : i32
    %c0_i32_0 = arith.constant 0 : i32
    return %arg0, %c0_i32 : i32, i32
  }
  func.func @transform_1(%arg0: i32, %arg1: i32) -> (i32, i32) {
    %c0_i32 = arith.constant 0 : i32
    %c0_i32_0 = arith.constant 0 : i32
    return %arg1, %c0_i32 : i32, i32
  }
  func.func @transform_2(%arg0: i32, %arg1: i32) -> (i32, i32) {
    %c0_i32 = arith.constant 0 : i32
    %c0_i32_0 = arith.constant 0 : i32
    return %c0_i32, %arg1 : i32, i32
  }
  func.func @transform_3(%arg0: i32, %arg1: i32) -> (i32, i32) {
    %c0_i32 = arith.constant 0 : i32
    %c0_i32_0 = arith.constant 0 : i32
    return %c0_i32, %arg1 : i32, i32
  }
  func.func @transform_4(%arg0: i32, %arg1: i32) -> (i32, i32) {
    %c0_i32 = arith.constant 0 : i32
    %c0_i32_0 = arith.constant 0 : i32
    %c0_i32_1 = arith.constant 0 : i32
    return %c0_i32, %c0_i32_0 : i32, i32
  }
  func.func @transform_5(%arg0: i32, %arg1: i32) -> (i32, i32) {
    %c0_i32 = arith.constant 0 : i32
    %c0_i32_0 = arith.constant 0 : i32
    return %arg0, %c0_i32 : i32, i32
  }
}

</mosaic_0001>

<bundles_post_ra>
// kernel: positionwise_ffn.1
= control target key start
LH: loop header
LB: loop body
LE: loop exit
PB: predicated region body
PF: predicated region fallthrough
CT: control target
= control target key end

     0   :  { %vm26_vm0 = vcmask 261120   ;;  %v309_v0 = vmov 0.0   ;;  %vm310_vm1 = vmmov 0   ;;  %vm147_vm2 = vcmask 523264   ;;  %s397_s0 = inlined_call_operand.vmem [shape: bf16[16,32], index: 0, kind: input, shape index: {}]   ;;  %s398_s1 = inlined_call_operand.vmem [shape: bf16[64,32], index: 1, kind: input, shape index: {}]   ;;  %s399_s2 = inlined_call_operand.vmem [shape: f32[1,64], index: 2, kind: input, shape index: {}]   ;;  %s400_s3 = inlined_call_operand.vmem [shape: bf16[32,64], index: 3, kind: input, shape index: {}]   ;;  %s401_s4 = inlined_call_operand.vmem [shape: f32[1,32], index: 4, kind: input, shape index: {}]   ;;  %s402_s5 = inlined_call_operand.hbm [shape: f32[16,32], index: 5, kind: output, shape index: {}]  }
   0x1   :  { %253 = vmatprep.subr.bf16.mxu0 %v309_v0  ;;  %v278_v1 = vld [vmem:[%s398_s1] sm:$0xff]   ;;  %27 = vst.msk [vmem:[#allocation2] sm:$0xff] %vm26_vm0, %v309_v0  ;;  %28 = vst.msk [vmem:[#allocation2 + $0x8] sm:$0xff] %vm26_vm0, %v309_v0  ;;  %265 = vmatprep.subr.bf16.mxu1 %v309_v0  ;;  %v279_v3 = vld [vmem:[%s398_s1 + $0x8] sm:$0xff]  }
   0x2   :  { %261 = vmatprep.mubr.msk.bf16.mxu0 %vm310_vm1, %v309_v0  ;;  %269 = vmatprep.mubr.msk.bf16.mxu1 %vm310_vm1, %v309_v0  ;;  %v76_v2 = vsel %vm26_vm0, %v278_v1, 0  ;;  %v283_v4 = vld [vmem:[%s400_s3] sm:$0xff]  }
   0x3   :  { %254 = vmatpush3.bf16.xpose.msra.mxu0 %v76_v2 }
   0x4   :  { %255 = vmatprep.subr.bf16.mxu0 %v309_v0 }
   0x5   :  { %10 = vsyncpa [#allocation4], 0  ;;  %v152_v5 = vsel %vm147_vm2, %v283_v4, 0  ;;  %v79_v6 = vsel %vm26_vm0, %v279_v3, 0  ;;  %v280_v7 = vld [vmem:[%s398_s1 + $0x10] sm:$0xff]   ;;  %v281_v9 = vld [vmem:[%s398_s1 + $0x18] sm:$0xff]  }
   0x6   :  { %266 = vmatpush3.bf16.xpose.msra.mxu1 %v152_v5  ;;  %v82_v8 = vsel %vm26_vm0, %v280_v7, 0  ;;  %v85_v10 = vsel %vm26_vm0, %v281_v9, 0  ;;  %v282_v11 = vld [vmem:[%s397_s0] sm:$0xff]   ;;  %v284_v12 = vld [vmem:[%s400_s3 + $0x8] sm:$0xff]  }
   0x7   :  { %267 = vmatprep.subr.bf16.mxu1 %v309_v0  ;;  %v155_v13 = vsel %vm147_vm2, %v284_v12, 0  ;;  %v234_v14 = vld [vmem:[%s399_s2] ss:$0 sm:$0xff]  ;;  %s311_s2 = smov [#allocation3]  }
   0x8   :  { %v130_v24 = vld [vmem:[#allocation2] sm:$0xff]  ;;  %v131_v26 = vld [vmem:[#allocation2 + $0x8] sm:$0xff]  ;;  %s223_s3 = sshll.u32 %s311_s2, 4  ;;  %s224_s3 = int_to_ptr.vmem [resolvable:$true] %s223_s3 }
   0x9   :  { %v244_v32 = vld [vmem:[%s401_s4] ss:$0 sm:$0xff]  ;;  %s285_s9 = scalar_lea.vmem %s224_s3, 256  ;;  %p290_p1 = scmp.lt.s32.totalorder %s224_s3, %s224_s3 }
   0xa   :  { %p286_p0 = scmp.ne.s32.totalorder %s224_s3, %s285_s9  ;;  %p291_p2 = scmp.lt.s32.totalorder %s285_s9, %s285_s9 }
   0xb   :  { %256 = vmatpush3.bf16.xpose.msra.mxu0 %v79_v6 }
   0xc   :  { %257 = vmatprep.subr.bf16.mxu0 %v309_v0  ;;  %p292_p3 = por %p291_p2, %p290_p1 }
   0xe   :  { %268 = vmatpush3.bf16.xpose.msra.mxu1 %v155_v13  ;;  %p293_p4 = pnand %p292_p3, %p286_p0 }
  0x13   :  { %258 = vmatpush3.bf16.xpose.msra.mxu0 %v82_v8 }
  0x14   :  { %259 = vmatprep.subr.bf16.mxu0 %v309_v0 }
  0x1b   :  { %260 = vmatpush3.bf16.xpose.msra.mxu0 %v85_v10 }
  0x22   :  { %262 = vmatmul.mubr.msk.bf16.vlgmr.msra.gmra.mrb[0].mxu0 %vm26_vm0, %v282_v11 }
  0xf5   :  { %v121_v15 = vpop.f32.mrb[0].mxu0 }
  0xf6   :  { %v122_v16 = vadd.f32 %v234_v14, %v121_v15  ;;  %v263_v17 = vpop.f32.mrb[1].mxu0 }
  0xf7   :  { %v124_v18 = vpop.f32.mrb[2].mxu0 }
  0xf8   :  { %v125_v19 = vadd.f32 %v234_v14, %v124_v18  ;;  %v264_v20 = vpop.f32.mrb[3].mxu0  ;;  %v128_v21 = vmax.f32 %v122_v16, 0.0 }
  0xfa   :  { %v129_v22 = vmax.f32 %v125_v19, 0.0 }
  0xfc   :  { %v132_v23 = vpack.c.bf16 %v129_v22, %v128_v21 }
  0xfe   :  { %270 = vmatmul.mubr.msk.bf16.vlgmr.msra.gmra.mrb[0].mxu1 %vm147_vm2, %v132_v23 }
 0x1d1   :  { %v191_v25 = vpop.f32.mrb[0].mxu1 }
 0x1d2   :  { %v198_v27 = vadd.f32 %v191_v25, %v130_v24  ;;  %v271_v28 = vpop.f32.mrb[1].mxu1 }
 0x1d3   :  { %v194_v29 = vpop.f32.mrb[2].mxu1 }
 0x1d4   :  { %200 = vst.msk [vmem:[#allocation2] sm:$0xff] %vm26_vm0, %v198_v27  ;;  %v199_v30 = vadd.f32 %v194_v29, %v131_v26  ;;  %v272_v31 = vpop.f32.mrb[3].mxu1 }
 0x1d6   :  { %201 = vst.msk [vmem:[#allocation2 + $0x8] sm:$0xff] %vm26_vm0, %v199_v30 }
 0x1db   :  { %v205_v33 = vld [vmem:[#allocation2] sm:$0xff] }
 0x1dc   :  { %v214_v34 = vadd.f32 %v244_v32, %v205_v33 }
 0x1dd   :  { %v206_v35 = vld [vmem:[#allocation2 + $0x8] sm:$0xff] }
 0x1de   :  { %v215_v36 = vadd.f32 %v244_v32, %v206_v35  ;;  %216 = vst.msk [vmem:[#allocation3] sm:$0xff] %vm26_vm0, %v214_v34 }
 0x1e0   :  { %217 = vst.msk [vmem:[#allocation3 + $0x8] sm:$0xff] %vm26_vm0, %v215_v36 }
 0x1e1   :  { %296 = shalt.err (!%p293_p4)
}
 0x1e2   :  { %s297_s11 = scalar_lea.hbm %s402_s5, 256 }
 0x1e3   :  { %p298_p5 = scmp.ne.s32.totalorder %s402_s5, %s297_s11  ;;  %p301_p6 = scmp.lt.u32.totalorder %s297_s11, %s402_s5 }
 0x1e5   :  { %p303_p7 = pnand %p301_p6, %p298_p5 }
 0x1e7   :  { %306 = shalt.err (!%p303_p7)
}
 0x1e8   :  { %s312_s16 = smov 128   ;;  %s313_s17 = smov 8  }
 0x1e9   :  { %229 = dma.vmem_to_hbm [thread:$0]  %s224_s3, 256, %s402_s5, [#allocation4], %s312_s16, %s312_s16, %s313_s17  }
 0x1ea   :  { %307 = dma.done.wait [#allocation4], 256  }
 0x1eb   :  { %308 = vsyncadd [#allocation4], 4294967040 }
 0x1ec   :  { %233 = vsyncpa [#allocation4], 1 }

</bundles_post_ra>
